<compile_context>
chip_gen: v6e
topology: v6e:2x2x1
jax: 0.10.0
libtpu: 0.0.40
codegen_flags: <defaults>
</compile_context>

<pallas_src>
import functools

import jax
import jax.numpy as jnp
from jax.experimental import pallas as pl
from jax.experimental.pallas import tpu as pltpu


# ---------------------------------------------------------------------------
# Fused bottleneck kernel body
# ---------------------------------------------------------------------------

def _bottleneck_body(x_ref, w1_ref, s1_ref, b1_ref, w2_ref, s2_ref, b2_ref,
                     w3_ref, s3_ref, b3_ref, wsc_ref, ssc_ref, bsc_ref,
                     o_ref, h1p_ref, *, H, W, Cin, Cmid, Cout, stride, has_proj):
    f32 = jnp.float32
    bf16 = jnp.bfloat16
    Ho, Wo = H // stride, W // stride

    # ---- conv1 (1x1) + bn1 + relu ------------------------------------------------
    x = x_ref[0]                                              # (H*W, Cin) bf16
    h1 = jnp.dot(x, w1_ref[...], preferred_element_type=f32)  # MXU, f32 accum
    h1 = jnp.maximum(h1 * s1_ref[...] + b1_ref[...], 0.0)

    # ---- stage zero-padded h1 in VMEM scratch (padding=1 for the 3x3 conv) -------
    # Full zero then interior overwrite: one aligned bulk store + one offset store.
    h1p_ref[...] = jnp.zeros((H + 2, W + 2, Cmid), f32)
    h1p_ref[1:H + 1, 1:W + 1, :] = h1.reshape(H, W, Cmid)

    # ---- conv2 (3x3, stride) + bn2 + relu -----------------------------------------
    # 9 shifted taps, each read as a windowed VMEM load from the padded scratch;
    # only strided output positions are computed.  Taps go to the MXU in bf16,
    # accumulation stays in f32.
    acc = jnp.zeros((Ho * Wo, Cmid), f32)
    for t in range(9):
        dy, dx = t // 3, t % 3
        win = h1p_ref[dy:dy + stride * Ho, dx:dx + stride * Wo, :]   # (sHo, sWo, Cmid)
        if stride > 1:
            # decimate to the strided output positions (H, W divisible by stride)
            win = win.reshape(Ho, stride, Wo, stride, Cmid)[:, 0, :, 0, :]
        tap = win.reshape(Ho * Wo, Cmid).astype(bf16)
        acc = acc + jnp.dot(tap, w2_ref[t], preferred_element_type=f32)
    h2 = jnp.maximum(acc * s2_ref[...] + b2_ref[...], 0.0).astype(bf16)

    # ---- conv3 (1x1) + bn3 + shortcut + relu (all fused) ---------------------------
    y = jnp.dot(h2, w3_ref[...], preferred_element_type=f32)
    y = y * s3_ref[...] + b3_ref[...]

    if stride > 1:
        xs = (x.reshape(H, W, Cin)
               .reshape(Ho, stride, Wo, stride, Cin)[:, 0, :, 0, :]
               .reshape(Ho * Wo, Cin))
    else:
        xs = x
    if has_proj:
        sc = jnp.dot(xs, wsc_ref[...], preferred_element_type=f32)
        sc = sc * ssc_ref[...] + bsc_ref[...]
    else:
        sc = xs.astype(f32)

    o_ref[0] = jnp.maximum(y + sc, 0.0).astype(o_ref.dtype)


# ---------------------------------------------------------------------------
# Pallas wrapper: one fused pallas_call for the whole bottleneck block
# ---------------------------------------------------------------------------

def slimmable_bottleneck(x_nhwc, params, stride=1):
    N, H, W, Cin = x_nhwc.shape
    Cmid = params["w1"].shape[1]
    Cout = params["w3"].shape[1]
    assert H % stride == 0 and W % stride == 0, "spatial dims must be divisible by stride"
    Ho, Wo = H // stride, W // stride
    has_proj = (stride != 1) or (Cin != Cout)

    x_flat = x_nhwc.astype(jnp.bfloat16).reshape(N, H * W, Cin)
    w2 = params["w2"].reshape(9, Cmid, Cmid)        # (3,3,Cmid,Cmid) -> (9,Cmid,Cmid)

    body = functools.partial(_bottleneck_body, H=H, W=W, Cin=Cin, Cmid=Cmid,
                             Cout=Cout, stride=stride, has_proj=has_proj)

    if has_proj:
        def kernel(x_r, w1, s1, b1, w2r, s2, b2, w3, s3, b3, wsc, ssc, bsc,
                   o_r, h1p_r):
            body(x_r, w1, s1, b1, w2r, s2, b2, w3, s3, b3, wsc, ssc, bsc, o_r, h1p_r)
    else:
        def kernel(x_r, w1, s1, b1, w2r, s2, b2, w3, s3, b3, o_r, h1p_r):
            body(x_r, w1, s1, b1, w2r, s2, b2, w3, s3, b3, None, None, None,
                 o_r, h1p_r)

    def _full(shape):
        return pl.BlockSpec(shape, lambda n: (0,) * len(shape))

    in_specs = [
        pl.BlockSpec((1, H * W, Cin), lambda n: (n, 0, 0)),
        _full((Cin, Cmid)), _full((1, Cmid)), _full((1, Cmid)),
        _full((9, Cmid, Cmid)), _full((1, Cmid)), _full((1, Cmid)),
        _full((Cmid, Cout)), _full((1, Cout)), _full((1, Cout)),
    ]
    args = [x_flat, params["w1"], params["s1"], params["b1"],
            w2, params["s2"], params["b2"],
            params["w3"], params["s3"], params["b3"]]
    if has_proj:
        in_specs += [_full((Cin, Cout)), _full((1, Cout)), _full((1, Cout))]
        args += [params["wsc"], params["ssc"], params["bsc"]]

    # Advisory cost hint for XLA scheduling around the fused custom call.
    flops = 2 * N * (H * W * Cin * Cmid
                     + Ho * Wo * 9 * Cmid * Cmid
                     + Ho * Wo * Cmid * Cout
                     + (Ho * Wo * Cin * Cout if has_proj else 0))
    weight_bytes = sum(int(a.size) * a.dtype.itemsize for a in args[1:])
    bytes_accessed = int(x_flat.size) * 2 + N * Ho * Wo * Cout * 2 + weight_bytes
    cost = pl.CostEstimate(flops=flops, transcendentals=0,
                           bytes_accessed=bytes_accessed)

    out = pl.pallas_call(
        kernel,
        out_shape=jax.ShapeDtypeStruct((N, Ho * Wo, Cout), jnp.bfloat16),
        grid_spec=pltpu.PrefetchScalarGridSpec(
            num_scalar_prefetch=0,
            grid=(N,),
            in_specs=in_specs,
            out_specs=pl.BlockSpec((1, Ho * Wo, Cout), lambda n: (n, 0, 0)),
            scratch_shapes=[pltpu.VMEM((H + 2, W + 2, Cmid), jnp.float32)],
        ),
        compiler_params=pltpu.CompilerParams(
            dimension_semantics=("parallel",),      # batch shards across TCs on v7x
            vmem_limit_bytes=32 * 1024 * 1024),     # safe on v5e/v6e/v7x
        cost_estimate=cost,
    )(*args)
    return out.reshape(N, Ho, Wo, Cout)


# ---------------------------------------------------------------------------
# Deterministic parameter construction (folded inference-mode BN, bf16 weights)
# ---------------------------------------------------------------------------

def _folded_bn(key, c, eps=1e-5):
    k1, k2, k3, k4 = jax.random.split(key, 4)
    gamma = jax.random.uniform(k1, (c,), minval=0.5, maxval=1.5)
    beta = 0.1 * jax.random.normal(k2, (c,))
    mean = 0.1 * jax.random.normal(k3, (c,))
    var = jax.random.uniform(k4, (c,), minval=0.5, maxval=1.5)
    scale = gamma / jnp.sqrt(var + eps)
    bias = beta - mean * scale
    return (scale.reshape(1, c).astype(jnp.float32),
            bias.reshape(1, c).astype(jnp.float32))


def init_params(key, in_planes, out_planes, expansion=4):
    cmid = out_planes
    cout = expansion * out_planes
    ks = jax.random.split(key, 8)
    bf16 = jnp.bfloat16
    p = {}
    p["w1"] = (0.1 * jax.random.normal(ks[0], (in_planes, cmid))).astype(bf16)
    p["s1"], p["b1"] = _folded_bn(ks[1], cmid)
    p["w2"] = (0.1 * jax.random.normal(ks[2], (3, 3, cmid, cmid))).astype(bf16)
    p["s2"], p["b2"] = _folded_bn(ks[3], cmid)
    p["w3"] = (0.1 * jax.random.normal(ks[4], (cmid, cout))).astype(bf16)
    p["s3"], p["b3"] = _folded_bn(ks[5], cout)
    p["wsc"] = (0.1 * jax.random.normal(ks[6], (in_planes, cout))).astype(bf16)
    p["ssc"], p["bsc"] = _folded_bn(ks[7], cout)
    return p


# ---------------------------------------------------------------------------
# Pure-JAX reference (mirrors the kernel's bf16-input / f32-accumulate numerics)
# ---------------------------------------------------------------------------

def reference(x, params, stride):
    f32 = jnp.float32
    bf16 = jnp.bfloat16
    Cout = params["w3"].shape[1]

    def bn(y, s, b):
        return y * s.reshape(1, 1, 1, -1) + b.reshape(1, 1, 1, -1)

    xb = x.astype(bf16)
    h = jnp.einsum("nhwc,cd->nhwd", xb.astype(f32), params["w1"].astype(f32))
    h = jax.nn.relu(bn(h, params["s1"], params["b1"])).astype(bf16)
    h = jax.lax.conv_general_dilated(
        h.astype(f32), params["w2"].astype(f32), (stride, stride), ((1, 1), (1, 1)),
        dimension_numbers=("NHWC", "HWIO", "NHWC"))
    h = jax.nn.relu(bn(h, params["s2"], params["b2"])).astype(bf16)
    y = bn(jnp.einsum("nhwc,cd->nhwd", h.astype(f32), params["w3"].astype(f32)),
           params["s3"], params["b3"])
    xs = xb[:, ::stride, ::stride, :]
    if stride != 1 or x.shape[-1] != Cout:
        sc = bn(jnp.einsum("nhwc,cd->nhwd", xs.astype(f32), params["wsc"].astype(f32)),
                params["ssc"], params["bsc"])
    else:
        sc = xs.astype(f32)
    return jax.nn.relu(y + sc)


# ---------------------------------------------------------------------------

if __name__ == "__main__":
    key = jax.random.PRNGKey(0)
    kp, kx = jax.random.split(key)

    N, H, W = 2, 8, 8
    in_planes, out_planes, stride = 16, 8, 1   # Cout = 4 * 8 = 32 (projection shortcut)

    params = init_params(kp, in_planes, out_planes)
    x = jax.random.normal(kx, (N, H, W, in_planes), dtype=jnp.float32)

    out = slimmable_bottleneck(x, params, stride=stride)
    out = jax.block_until_ready(out)

    ref = reference(x, params, stride)
    err = float(jnp.max(jnp.abs(out.astype(jnp.float32) - ref)))
    if err > 5e-2:
        raise AssertionError(f"mismatch vs reference, max abs err = {err}")

    print("KERNEL_OK")
</pallas_src>

<mosaic_0001>
module attributes {stable_mosaic.version = 11 : i64} {
  func.func @kernel(%arg0: i32, %arg1: memref<1x64x16xbf16, #tpu.memory_space<vmem>>, %arg2: memref<16x8xbf16, #tpu.memory_space<vmem>>, %arg3: memref<1x8xf32, #tpu.memory_space<vmem>>, %arg4: memref<1x8xf32, #tpu.memory_space<vmem>>, %arg5: memref<9x8x8xbf16, #tpu.memory_space<vmem>>, %arg6: memref<1x8xf32, #tpu.memory_space<vmem>>, %arg7: memref<1x8xf32, #tpu.memory_space<vmem>>, %arg8: memref<8x32xbf16, #tpu.memory_space<vmem>>, %arg9: memref<1x32xf32, #tpu.memory_space<vmem>>, %arg10: memref<1x32xf32, #tpu.memory_space<vmem>>, %arg11: memref<16x32xbf16, #tpu.memory_space<vmem>>, %arg12: memref<1x32xf32, #tpu.memory_space<vmem>>, %arg13: memref<1x32xf32, #tpu.memory_space<vmem>>, %arg14: memref<1x64x32xbf16, #tpu.memory_space<vmem>>, %arg15: memref<10x10x8xf32, #tpu.memory_space<vmem>>) attributes {dimension_semantics = [#tpu.dimension_semantics<parallel>], iteration_bounds = array<i64: 2>, scalar_prefetch = 0 : i64, scratch_operands = 1 : i64, tpu.core_type = #tpu.core_type<tc>, window_params = [{transform_indices = @transform_0, window_bounds = array<i64: 1, 64, 16>}, {pipeline_mode = #tpu.pipeline_mode<synchronous>, transform_indices = @transform_1, window_bounds = array<i64: 16, 8>}, {pipeline_mode = #tpu.pipeline_mode<synchronous>, transform_indices = @transform_2, window_bounds = array<i64: 1, 8>}, {pipeline_mode = #tpu.pipeline_mode<synchronous>, transform_indices = @transform_3, window_bounds = array<i64: 1, 8>}, {pipeline_mode = #tpu.pipeline_mode<synchronous>, transform_indices = @transform_4, window_bounds = array<i64: 9, 8, 8>}, {pipeline_mode = #tpu.pipeline_mode<synchronous>, transform_indices = @transform_5, window_bounds = array<i64: 1, 8>}, {pipeline_mode = #tpu.pipeline_mode<synchronous>, transform_indices = @transform_6, window_bounds = array<i64: 1, 8>}, {pipeline_mode = #tpu.pipeline_mode<synchronous>, transform_indices = @transform_7, window_bounds = array<i64: 8, 32>}, {pipeline_mode = #tpu.pipeline_mode<synchronous>, transform_indices = @transform_8, window_bounds = array<i64: 1, 32>}, {pipeline_mode = #tpu.pipeline_mode<synchronous>, transform_indices = @transform_9, window_bounds = array<i64: 1, 32>}, {pipeline_mode = #tpu.pipeline_mode<synchronous>, transform_indices = @transform_10, window_bounds = array<i64: 16, 32>}, {pipeline_mode = #tpu.pipeline_mode<synchronous>, transform_indices = @transform_11, window_bounds = array<i64: 1, 32>}, {pipeline_mode = #tpu.pipeline_mode<synchronous>, transform_indices = @transform_12, window_bounds = array<i64: 1, 32>}, {transform_indices = @transform_13, window_bounds = array<i64: 1, 64, 32>}]} {
    %c0 = arith.constant 0 : index
    %c0_0 = arith.constant 0 : index
    %c0_1 = arith.constant 0 : index
    %0 = vector.load %arg1[%c0, %c0_0, %c0_1] : memref<1x64x16xbf16, #tpu.memory_space<vmem>>, vector<1x64x16xbf16>
    %1 = vector.shape_cast %0 : vector<1x64x16xbf16> to vector<64x16xbf16>
    %c0_2 = arith.constant 0 : index
    %c0_3 = arith.constant 0 : index
    %2 = vector.load %arg2[%c0_2, %c0_3] : memref<16x8xbf16, #tpu.memory_space<vmem>>, vector<16x8xbf16>
    %cst = arith.constant dense<0.000000e+00> : vector<64x8xf32>
    %3 = tpu.matmul %1, %2, %cst {dimension_numbers = #tpu.dot_dimension_numbers<[1], [0], [0], [1], [0, 0, 1, 1], [], []>} : vector<64x16xbf16>, vector<16x8xbf16>, vector<64x8xf32> -> vector<64x8xf32>
    %c0_4 = arith.constant 0 : index
    %c0_5 = arith.constant 0 : index
    %4 = vector.load %arg3[%c0_4, %c0_5] : memref<1x8xf32, #tpu.memory_space<vmem>>, vector<1x8xf32>
    %5 = vector.broadcast %4 : vector<1x8xf32> to vector<64x8xf32>
    %6 = arith.mulf %3, %5 : vector<64x8xf32>
    %c0_6 = arith.constant 0 : index
    %c0_7 = arith.constant 0 : index
    %7 = vector.load %arg4[%c0_6, %c0_7] : memref<1x8xf32, #tpu.memory_space<vmem>>, vector<1x8xf32>
    %8 = vector.broadcast %7 : vector<1x8xf32> to vector<64x8xf32>
    %9 = arith.addf %6, %8 : vector<64x8xf32>
    %cst_8 = arith.constant 0.000000e+00 : f32
    %10 = vector.broadcast %cst_8 : f32 to vector<64x8xf32>
    %11 = arith.maximumf %9, %10 : vector<64x8xf32>
    %cst_9 = arith.constant 0.000000e+00 : f32
    %12 = vector.broadcast %cst_9 : f32 to vector<10x10x8xf32>
    %c0_10 = arith.constant 0 : index
    %c0_11 = arith.constant 0 : index
    %c0_12 = arith.constant 0 : index
    %13 = vector.load %arg15[%c0_10, %c0_11, %c0_12] : memref<10x10x8xf32, #tpu.memory_space<vmem>>, vector<10x10x8xf32>
    tpu.vector_store %arg15[%c0_10, %c0_11, %c0_12], %12 {strides = array<i32>} : memref<10x10x8xf32, #tpu.memory_space<vmem>>, vector<10x10x8xf32>,
    %14 = vector.shape_cast %11 : vector<64x8xf32> to vector<8x8x8xf32>
    %c1 = arith.constant 1 : index
    %c1_13 = arith.constant 1 : index
    %c0_14 = arith.constant 0 : index
    %15 = vector.load %arg15[%c1, %c1_13, %c0_14] : memref<10x10x8xf32, #tpu.memory_space<vmem>>, vector<8x8x8xf32>
    tpu.vector_store %arg15[%c1, %c1_13, %c0_14], %14 {strides = array<i32>} : memref<10x10x8xf32, #tpu.memory_space<vmem>>, vector<8x8x8xf32>,
    %cst_15 = arith.constant 0.000000e+00 : f32
    %16 = vector.broadcast %cst_15 : f32 to vector<64x8xf32>
    %c0_16 = arith.constant 0 : index
    %c0_17 = arith.constant 0 : index
    %c0_18 = arith.constant 0 : index
    %17 = vector.load %arg15[%c0_16, %c0_17, %c0_18] : memref<10x10x8xf32, #tpu.memory_space<vmem>>, vector<8x8x8xf32>
    %18 = vector.shape_cast %17 : vector<8x8x8xf32> to vector<64x8xf32>
    %19 = arith.truncf %18 : vector<64x8xf32> to vector<64x8xbf16>
    %c0_19 = arith.constant 0 : index
    %c0_20 = arith.constant 0 : index
    %c0_21 = arith.constant 0 : index
    %20 = vector.load %arg5[%c0_19, %c0_20, %c0_21] : memref<9x8x8xbf16, #tpu.memory_space<vmem>>, vector<1x8x8xbf16>
    %21 = vector.shape_cast %20 : vector<1x8x8xbf16> to vector<8x8xbf16>
    %cst_22 = arith.constant dense<0.000000e+00> : vector<64x8xf32>
    %22 = tpu.matmul %19, %21, %cst_22 {dimension_numbers = #tpu.dot_dimension_numbers<[1], [0], [0], [1], [0, 0, 1, 1], [], []>} : vector<64x8xbf16>, vector<8x8xbf16>, vector<64x8xf32> -> vector<64x8xf32>
    %23 = arith.addf %16, %22 : vector<64x8xf32>
    %c0_23 = arith.constant 0 : index
    %c1_24 = arith.constant 1 : index
    %c0_25 = arith.constant 0 : index
    %24 = vector.load %arg15[%c0_23, %c1_24, %c0_25] : memref<10x10x8xf32, #tpu.memory_space<vmem>>, vector<8x8x8xf32>
    %25 = vector.shape_cast %24 : vector<8x8x8xf32> to vector<64x8xf32>
    %26 = arith.truncf %25 : vector<64x8xf32> to vector<64x8xbf16>
    %c1_26 = arith.constant 1 : index
    %c0_27 = arith.constant 0 : index
    %c0_28 = arith.constant 0 : index
    %27 = vector.load %arg5[%c1_26, %c0_27, %c0_28] : memref<9x8x8xbf16, #tpu.memory_space<vmem>>, vector<1x8x8xbf16>
    %28 = vector.shape_cast %27 : vector<1x8x8xbf16> to vector<8x8xbf16>
    %cst_29 = arith.constant dense<0.000000e+00> : vector<64x8xf32>
    %29 = tpu.matmul %26, %28, %cst_29 {dimension_numbers = #tpu.dot_dimension_numbers<[1], [0], [0], [1], [0, 0, 1, 1], [], []>} : vector<64x8xbf16>, vector<8x8xbf16>, vector<64x8xf32> -> vector<64x8xf32>
    %30 = arith.addf %23, %29 : vector<64x8xf32>
    %c0_30 = arith.constant 0 : index
    %c2 = arith.constant 2 : index
    %c0_31 = arith.constant 0 : index
    %31 = vector.load %arg15[%c0_30, %c2, %c0_31] : memref<10x10x8xf32, #tpu.memory_space<vmem>>, vector<8x8x8xf32>
    %32 = vector.shape_cast %31 : vector<8x8x8xf32> to vector<64x8xf32>
    %33 = arith.truncf %32 : vector<64x8xf32> to vector<64x8xbf16>
    %c2_32 = arith.constant 2 : index
    %c0_33 = arith.constant 0 : index
    %c0_34 = arith.constant 0 : index
    %34 = vector.load %arg5[%c2_32, %c0_33, %c0_34] : memref<9x8x8xbf16, #tpu.memory_space<vmem>>, vector<1x8x8xbf16>
    %35 = vector.shape_cast %34 : vector<1x8x8xbf16> to vector<8x8xbf16>
    %cst_35 = arith.constant dense<0.000000e+00> : vector<64x8xf32>
    %36 = tpu.matmul %33, %35, %cst_35 {dimension_numbers = #tpu.dot_dimension_numbers<[1], [0], [0], [1], [0, 0, 1, 1], [], []>} : vector<64x8xbf16>, vector<8x8xbf16>, vector<64x8xf32> -> vector<64x8xf32>
    %37 = arith.addf %30, %36 : vector<64x8xf32>
    %c1_36 = arith.constant 1 : index
    %c0_37 = arith.constant 0 : index
    %c0_38 = arith.constant 0 : index
    %38 = vector.load %arg15[%c1_36, %c0_37, %c0_38] : memref<10x10x8xf32, #tpu.memory_space<vmem>>, vector<8x8x8xf32>
    %39 = vector.shape_cast %38 : vector<8x8x8xf32> to vector<64x8xf32>
    %40 = arith.truncf %39 : vector<64x8xf32> to vector<64x8xbf16>
    %c3 = arith.constant 3 : index
    %c0_39 = arith.constant 0 : index
    %c0_40 = arith.constant 0 : index
    %41 = vector.load %arg5[%c3, %c0_39, %c0_40] : memref<9x8x8xbf16, #tpu.memory_space<vmem>>, vector<1x8x8xbf16>
    %42 = vector.shape_cast %41 : vector<1x8x8xbf16> to vector<8x8xbf16>
    %cst_41 = arith.constant dense<0.000000e+00> : vector<64x8xf32>
    %43 = tpu.matmul %40, %42, %cst_41 {dimension_numbers = #tpu.dot_dimension_numbers<[1], [0], [0], [1], [0, 0, 1, 1], [], []>} : vector<64x8xbf16>, vector<8x8xbf16>, vector<64x8xf32> -> vector<64x8xf32>
    %44 = arith.addf %37, %43 : vector<64x8xf32>
    %c1_42 = arith.constant 1 : index
    %c1_43 = arith.constant 1 : index
    %c0_44 = arith.constant 0 : index
    %45 = vector.load %arg15[%c1_42, %c1_43, %c0_44] : memref<10x10x8xf32, #tpu.memory_space<vmem>>, vector<8x8x8xf32>
    %46 = vector.shape_cast %45 : vector<8x8x8xf32> to vector<64x8xf32>
    %47 = arith.truncf %46 : vector<64x8xf32> to vector<64x8xbf16>
    %c4 = arith.constant 4 : index
    %c0_45 = arith.constant 0 : index
    %c0_46 = arith.constant 0 : index
    %48 = vector.load %arg5[%c4, %c0_45, %c0_46] : memref<9x8x8xbf16, #tpu.memory_space<vmem>>, vector<1x8x8xbf16>
    %49 = vector.shape_cast %48 : vector<1x8x8xbf16> to vector<8x8xbf16>
    %cst_47 = arith.constant dense<0.000000e+00> : vector<64x8xf32>
    %50 = tpu.matmul %47, %49, %cst_47 {dimension_numbers = #tpu.dot_dimension_numbers<[1], [0], [0], [1], [0, 0, 1, 1], [], []>} : vector<64x8xbf16>, vector<8x8xbf16>, vector<64x8xf32> -> vector<64x8xf32>
    %51 = arith.addf %44, %50 : vector<64x8xf32>
    %c1_48 = arith.constant 1 : index
    %c2_49 = arith.constant 2 : index
    %c0_50 = arith.constant 0 : index
    %52 = vector.load %arg15[%c1_48, %c2_49, %c0_50] : memref<10x10x8xf32, #tpu.memory_space<vmem>>, vector<8x8x8xf32>
    %53 = vector.shape_cast %52 : vector<8x8x8xf32> to vector<64x8xf32>
    %54 = arith.truncf %53 : vector<64x8xf32> to vector<64x8xbf16>
    %c5 = arith.constant 5 : index
    %c0_51 = arith.constant 0 : index
    %c0_52 = arith.constant 0 : index
    %55 = vector.load %arg5[%c5, %c0_51, %c0_52] : memref<9x8x8xbf16, #tpu.memory_space<vmem>>, vector<1x8x8xbf16>
    %56 = vector.shape_cast %55 : vector<1x8x8xbf16> to vector<8x8xbf16>
    %cst_53 = arith.constant dense<0.000000e+00> : vector<64x8xf32>
    %57 = tpu.matmul %54, %56, %cst_53 {dimension_numbers = #tpu.dot_dimension_numbers<[1], [0], [0], [1], [0, 0, 1, 1], [], []>} : vector<64x8xbf16>, vector<8x8xbf16>, vector<64x8xf32> -> vector<64x8xf32>
    %58 = arith.addf %51, %57 : vector<64x8xf32>
    %c2_54 = arith.constant 2 : index
    %c0_55 = arith.constant 0 : index
    %c0_56 = arith.constant 0 : index
    %59 = vector.load %arg15[%c2_54, %c0_55, %c0_56] : memref<10x10x8xf32, #tpu.memory_space<vmem>>, vector<8x8x8xf32>
    %60 = vector.shape_cast %59 : vector<8x8x8xf32> to vector<64x8xf32>
    %61 = arith.truncf %60 : vector<64x8xf32> to vector<64x8xbf16>
    %c6 = arith.constant 6 : index
    %c0_57 = arith.constant 0 : index
    %c0_58 = arith.constant 0 : index
    %62 = vector.load %arg5[%c6, %c0_57, %c0_58] : memref<9x8x8xbf16, #tpu.memory_space<vmem>>, vector<1x8x8xbf16>
    %63 = vector.shape_cast %62 : vector<1x8x8xbf16> to vector<8x8xbf16>
    %cst_59 = arith.constant dense<0.000000e+00> : vector<64x8xf32>
    %64 = tpu.matmul %61, %63, %cst_59 {dimension_numbers = #tpu.dot_dimension_numbers<[1], [0], [0], [1], [0, 0, 1, 1], [], []>} : vector<64x8xbf16>, vector<8x8xbf16>, vector<64x8xf32> -> vector<64x8xf32>
    %65 = arith.addf %58, %64 : vector<64x8xf32>
    %c2_60 = arith.constant 2 : index
    %c1_61 = arith.constant 1 : index
    %c0_62 = arith.constant 0 : index
    %66 = vector.load %arg15[%c2_60, %c1_61, %c0_62] : memref<10x10x8xf32, #tpu.memory_space<vmem>>, vector<8x8x8xf32>
    %67 = vector.shape_cast %66 : vector<8x8x8xf32> to vector<64x8xf32>
    %68 = arith.truncf %67 : vector<64x8xf32> to vector<64x8xbf16>
    %c7 = arith.constant 7 : index
    %c0_63 = arith.constant 0 : index
    %c0_64 = arith.constant 0 : index
    %69 = vector.load %arg5[%c7, %c0_63, %c0_64] : memref<9x8x8xbf16, #tpu.memory_space<vmem>>, vector<1x8x8xbf16>
    %70 = vector.shape_cast %69 : vector<1x8x8xbf16> to vector<8x8xbf16>
    %cst_65 = arith.constant dense<0.000000e+00> : vector<64x8xf32>
    %71 = tpu.matmul %68, %70, %cst_65 {dimension_numbers = #tpu.dot_dimension_numbers<[1], [0], [0], [1], [0, 0, 1, 1], [], []>} : vector<64x8xbf16>, vector<8x8xbf16>, vector<64x8xf32> -> vector<64x8xf32>
    %72 = arith.addf %65, %71 : vector<64x8xf32>
    %c2_66 = arith.constant 2 : index
    %c2_67 = arith.constant 2 : index
    %c0_68 = arith.constant 0 : index
    %73 = vector.load %arg15[%c2_66, %c2_67, %c0_68] : memref<10x10x8xf32, #tpu.memory_space<vmem>>, vector<8x8x8xf32>
    %74 = vector.shape_cast %73 : vector<8x8x8xf32> to vector<64x8xf32>
    %75 = arith.truncf %74 : vector<64x8xf32> to vector<64x8xbf16>
    %c8 = arith.constant 8 : index
    %c0_69 = arith.constant 0 : index
    %c0_70 = arith.constant 0 : index
    %76 = vector.load %arg5[%c8, %c0_69, %c0_70] : memref<9x8x8xbf16, #tpu.memory_space<vmem>>, vector<1x8x8xbf16>
    %77 = vector.shape_cast %76 : vector<1x8x8xbf16> to vector<8x8xbf16>
    %cst_71 = arith.constant dense<0.000000e+00> : vector<64x8xf32>
    %78 = tpu.matmul %75, %77, %cst_71 {dimension_numbers = #tpu.dot_dimension_numbers<[1], [0], [0], [1], [0, 0, 1, 1], [], []>} : vector<64x8xbf16>, vector<8x8xbf16>, vector<64x8xf32> -> vector<64x8xf32>
    %79 = arith.addf %72, %78 : vector<64x8xf32>
    %c0_72 = arith.constant 0 : index
    %c0_73 = arith.constant 0 : index
    %80 = vector.load %arg6[%c0_72, %c0_73] : memref<1x8xf32, #tpu.memory_space<vmem>>, vector<1x8xf32>
    %81 = vector.broadcast %80 : vector<1x8xf32> to vector<64x8xf32>
    %82 = arith.mulf %79, %81 : vector<64x8xf32>
    %c0_74 = arith.constant 0 : index
    %c0_75 = arith.constant 0 : index
    %83 = vector.load %arg7[%c0_74, %c0_75] : memref<1x8xf32, #tpu.memory_space<vmem>>, vector<1x8xf32>
    %84 = vector.broadcast %83 : vector<1x8xf32> to vector<64x8xf32>
    %85 = arith.addf %82, %84 : vector<64x8xf32>
    %cst_76 = arith.constant 0.000000e+00 : f32
    %86 = vector.broadcast %cst_76 : f32 to vector<64x8xf32>
    %87 = arith.maximumf %85, %86 : vector<64x8xf32>
    %88 = arith.truncf %87 : vector<64x8xf32> to vector<64x8xbf16>
    %c0_77 = arith.constant 0 : index
    %c0_78 = arith.constant 0 : index
    %89 = vector.load %arg8[%c0_77, %c0_78] : memref<8x32xbf16, #tpu.memory_space<vmem>>, vector<8x32xbf16>
    %cst_79 = arith.constant dense<0.000000e+00> : vector<64x32xf32>
    %90 = tpu.matmul %88, %89, %cst_79 {dimension_numbers = #tpu.dot_dimension_numbers<[1], [0], [0], [1], [0, 0, 1, 1], [], []>} : vector<64x8xbf16>, vector<8x32xbf16>, vector<64x32xf32> -> vector<64x32xf32>
    %c0_80 = arith.constant 0 : index
    %c0_81 = arith.constant 0 : index
    %91 = vector.load %arg9[%c0_80, %c0_81] : memref<1x32xf32, #tpu.memory_space<vmem>>, vector<1x32xf32>
    %92 = vector.broadcast %91 : vector<1x32xf32> to vector<64x32xf32>
    %93 = arith.mulf %90, %92 : vector<64x32xf32>
    %c0_82 = arith.constant 0 : index
    %c0_83 = arith.constant 0 : index
    %94 = vector.load %arg10[%c0_82, %c0_83] : memref<1x32xf32, #tpu.memory_space<vmem>>, vector<1x32xf32>
    %95 = vector.broadcast %94 : vector<1x32xf32> to vector<64x32xf32>
    %96 = arith.addf %93, %95 : vector<64x32xf32>
    %c0_84 = arith.constant 0 : index
    %c0_85 = arith.constant 0 : index
    %97 = vector.load %arg11[%c0_84, %c0_85] : memref<16x32xbf16, #tpu.memory_space<vmem>>, vector<16x32xbf16>
    %cst_86 = arith.constant dense<0.000000e+00> : vector<64x32xf32>
    %98 = tpu.matmul %1, %97, %cst_86 {dimension_numbers = #tpu.dot_dimension_numbers<[1], [0], [0], [1], [0, 0, 1, 1], [], []>} : vector<64x16xbf16>, vector<16x32xbf16>, vector<64x32xf32> -> vector<64x32xf32>
    %c0_87 = arith.constant 0 : index
    %c0_88 = arith.constant 0 : index
    %99 = vector.load %arg12[%c0_87, %c0_88] : memref<1x32xf32, #tpu.memory_space<vmem>>, vector<1x32xf32>
    %100 = vector.broadcast %99 : vector<1x32xf32> to vector<64x32xf32>
    %101 = arith.mulf %98, %100 : vector<64x32xf32>
    %c0_89 = arith.constant 0 : index
    %c0_90 = arith.constant 0 : index
    %102 = vector.load %arg13[%c0_89, %c0_90] : memref<1x32xf32, #tpu.memory_space<vmem>>, vector<1x32xf32>
    %103 = vector.broadcast %102 : vector<1x32xf32> to vector<64x32xf32>
    %104 = arith.addf %101, %103 : vector<64x32xf32>
    %105 = arith.addf %96, %104 : vector<64x32xf32>
    %cst_91 = arith.constant 0.000000e+00 : f32
    %106 = vector.broadcast %cst_91 : f32 to vector<64x32xf32>
    %107 = arith.maximumf %105, %106 : vector<64x32xf32>
    %108 = arith.truncf %107 : vector<64x32xf32> to vector<64x32xbf16>
    %c0_92 = arith.constant 0 : index
    %c0_93 = arith.constant 0 : index
    %c0_94 = arith.constant 0 : index
    %109 = vector.load %arg14[%c0_92, %c0_93, %c0_94] : memref<1x64x32xbf16, #tpu.memory_space<vmem>>, vector<1x64x32xbf16>
    %110 = vector.shape_cast %109 : vector<1x64x32xbf16> to vector<64x32xbf16>
    %111 = vector.shape_cast %108 : vector<64x32xbf16> to vector<1x64x32xbf16>
    tpu.vector_store %arg14[%c0_92, %c0_93, %c0_94], %111 {strides = array<i32>} : memref<1x64x32xbf16, #tpu.memory_space<vmem>>, vector<1x64x32xbf16>,
    return
  }
  func.func @transform_0(%arg0: i32) -> (i32, i32, i32) {
    %c0_i32 = arith.constant 0 : i32
    %c0_i32_0 = arith.constant 0 : i32
    %c0_i32_1 = arith.constant 0 : i32
    return %arg0, %c0_i32, %c0_i32_0 : i32, i32, i32
  }
  func.func @transform_1(%arg0: i32) -> (i32, i32) {
    %c0_i32 = arith.constant 0 : i32
    %c0_i32_0 = arith.constant 0 : i32
    %c0_i32_1 = arith.constant 0 : i32
    return %c0_i32, %c0_i32_0 : i32, i32
  }
  func.func @transform_2(%arg0: i32) -> (i32, i32) {
    %c0_i32 = arith.constant 0 : i32
    %c0_i32_0 = arith.constant 0 : i32
    %c0_i32_1 = arith.constant 0 : i32
    return %c0_i32, %c0_i32_0 : i32, i32
  }
  func.func @transform_3(%arg0: i32) -> (i32, i32) {
    %c0_i32 = arith.constant 0 : i32
    %c0_i32_0 = arith.constant 0 : i32
    %c0_i32_1 = arith.constant 0 : i32
    return %c0_i32, %c0_i32_0 : i32, i32
  }
  func.func @transform_4(%arg0: i32) -> (i32, i32, i32) {
    %c0_i32 = arith.constant 0 : i32
    %c0_i32_0 = arith.constant 0 : i32
    %c0_i32_1 = arith.constant 0 : i32
    %c0_i32_2 = arith.constant 0 : i32
    return %c0_i32, %c0_i32_0, %c0_i32_1 : i32, i32, i32
  }
  func.func @transform_5(%arg0: i32) -> (i32, i32) {
    %c0_i32 = arith.constant 0 : i32
    %c0_i32_0 = arith.constant 0 : i32
    %c0_i32_1 = arith.constant 0 : i32
    return %c0_i32, %c0_i32_0 : i32, i32
  }
  func.func @transform_6(%arg0: i32) -> (i32, i32) {
    %c0_i32 = arith.constant 0 : i32
    %c0_i32_0 = arith.constant 0 : i32
    %c0_i32_1 = arith.constant 0 : i32
    return %c0_i32, %c0_i32_0 : i32, i32
  }
  func.func @transform_7(%arg0: i32) -> (i32, i32) {
    %c0_i32 = arith.constant 0 : i32
    %c0_i32_0 = arith.constant 0 : i32
    %c0_i32_1 = arith.constant 0 : i32
    return %c0_i32, %c0_i32_0 : i32, i32
  }
  func.func @transform_8(%arg0: i32) -> (i32, i32) {
    %c0_i32 = arith.constant 0 : i32
    %c0_i32_0 = arith.constant 0 : i32
    %c0_i32_1 = arith.constant 0 : i32
    return %c0_i32, %c0_i32_0 : i32, i32
  }
  func.func @transform_9(%arg0: i32) -> (i32, i32) {
    %c0_i32 = arith.constant 0 : i32
    %c0_i32_0 = arith.constant 0 : i32
    %c0_i32_1 = arith.constant 0 : i32
    return %c0_i32, %c0_i32_0 : i32, i32
  }
  func.func @transform_10(%arg0: i32) -> (i32, i32) {
    %c0_i32 = arith.constant 0 : i32
    %c0_i32_0 = arith.constant 0 : i32
    %c0_i32_1 = arith.constant 0 : i32
    return %c0_i32, %c0_i32_0 : i32, i32
  }
  func.func @transform_11(%arg0: i32) -> (i32, i32) {
    %c0_i32 = arith.constant 0 : i32
    %c0_i32_0 = arith.constant 0 : i32
    %c0_i32_1 = arith.constant 0 : i32
    return %c0_i32, %c0_i32_0 : i32, i32
  }
  func.func @transform_12(%arg0: i32) -> (i32, i32) {
    %c0_i32 = arith.constant 0 : i32
    %c0_i32_0 = arith.constant 0 : i32
    %c0_i32_1 = arith.constant 0 : i32
    return %c0_i32, %c0_i32_0 : i32, i32
  }
  func.func @transform_13(%arg0: i32) -> (i32, i32, i32) {
    %c0_i32 = arith.constant 0 : i32
    %c0_i32_0 = arith.constant 0 : i32
    %c0_i32_1 = arith.constant 0 : i32
    return %arg0, %c0_i32, %c0_i32_0 : i32, i32, i32
  }
}

</mosaic_0001>

<bundles_post_ra>
// kernel: tpu_custom_call.1
= control target key start
LH: loop header
LB: loop body
LE: loop exit
PB: predicated region body
PF: predicated region fallthrough
CT: control target
= control target key end

     0   :  { %s2279_s25 = smov 0   ;;  %s2582_s0 = inlined_call_operand.vmem [shape: bf16[2,64,16], index: 0, kind: input, shape index: {}]   ;;  %s2583_s1 = inlined_call_operand.vmem [shape: bf16[16,8], index: 1, kind: input, shape index: {}]   ;;  %s2584_s2 = inlined_call_operand.vmem [shape: f32[1,8], index: 2, kind: input, shape index: {}]   ;;  %s2585_s3 = inlined_call_operand.vmem [shape: f32[1,8], index: 3, kind: input, shape index: {}]   ;;  %s2586_s4 = inlined_call_operand.vmem [shape: bf16[9,8,8], index: 4, kind: input, shape index: {}]   ;;  %s2587_s5 = inlined_call_operand.vmem [shape: f32[1,8], index: 5, kind: input, shape index: {}]   ;;  %s2588_s6 = inlined_call_operand.vmem [shape: f32[1,8], index: 6, kind: input, shape index: {}]   ;;  %s2589_s7 = inlined_call_operand.vmem [shape: bf16[8,32], index: 7, kind: input, shape index: {}]   ;;  %s2590_s8 = inlined_call_operand.vmem [shape: f32[1,32], index: 8, kind: input, shape index: {}]   ;;  %s2591_s9 = inlined_call_operand.vmem [shape: f32[1,32], index: 9, kind: input, shape index: {}]   ;;  %s2592_s10 = inlined_call_operand.vmem [shape: bf16[16,32], index: 10, kind: input, shape index: {}]   ;;  %s2593_s11 = inlined_call_operand.vmem [shape: f32[1,32], index: 11, kind: input, shape index: {}]   ;;  %s2594_s12 = inlined_call_operand.vmem [shape: f32[1,32], index: 12, kind: input, shape index: {}]   ;;  %s2595_s13 = inlined_call_operand.vmem [shape: bf16[2,64,32], index: 13, kind: output, shape index: {}]  }
   0x1 LB: > { %s1896_s26 = sadd.s32 4294967295, %s2206_s25   ;;  %p1900_p0 = scmp.ge.s32.totalorder %s2206_s25, 1  ;;  %s2206_s25 = sphi %s2279_s25, %s23_s25  }
   0x2   : > { %p387_p1 = scmp.lt.s32.totalorder %s2206_s25, 3 }
   0x4   : > { %p388_p2 = pnand %p1900_p0, %p387_p1 }
   0x6   : > { %391 = sbr.rel (%p388_p2) target bundleno = 725 (0x2d5), region = 72 }
   0xb   : > { %v2194_v0 = vld [vmem:[%s2583_s1] sm:$0xff]   ;;  %p431_p3 = scmp.lt.s32.totalorder %s1896_s26, 1  ;;  %vm478_vm0 = vcmask 130048   ;;  %vm594_vm1 = vcmask 64512   ;;  %vm596_vm2 = vcmask 58368   ;;  %v2208_v5 = vmov 0.0  }
   0xc   : > { %2055 = vmatprep.subr.bf16.mxu0 %v2194_v0  ;;  %602 = vst.msk [vmem:[#allocation2 + $0x30] sm:$0xff] %vm594_vm1, %v2208_v5  ;;  %595 = vst.msk [vmem:[#allocation2] sm:$0xff] %vm594_vm1, %v2208_v5  ;;  %v1916_v6 = vld [vmem:[%s2586_s4 + $0x4] sm:$0xf]  ;;  %vm664_vm3 = vcmask 1043456   ;;  %vm1832_vm4 = vcmask 257024  }
   0xd   : > { %s2603_s26 = smov (!%p431_p3, %s1896_s26), 1  ;;  %2056 = vmatpush3.bf16.msra.mxu0 %v2194_v0  ;;  %603 = vst.msk [vmem:[#allocation2 + $0x38] sm:$0x3] %vm596_vm2, %v2208_v5  ;;  %597 = vst.msk [vmem:[#allocation2 + $0x8] sm:$0x3] %vm596_vm2, %v2208_v5  ;;  %2175 = vmatprep.subr.msk.bf16.mxu1 %vm664_vm3, %v1916_v6  ;;  %v666_v8 = vsel %vm664_vm3, %v1916_v6, 0 }
   0xe   : > { %s1985_s29 = sshll.u32 %s2603_s26, 5  ;;  %598 = vst.msk [vmem:[#allocation2 + $0x10] sm:$0xff] %vm594_vm1, %v2208_v5  ;;  %600 = vst.msk [vmem:[#allocation2 + $0x20] sm:$0xff] %vm594_vm1, %v2208_v5  ;;  %v637_v7 = vld [vmem:[%s2586_s4] sm:$0xf]  ;;  %2066 = vmatpush3.bf16.msra.mxu1 %v666_v8 }
   0xf   : > { %s435_s15 = scalar_lea.vmem %s2582_s0, %s1985_s29  ;;  %599 = vst.msk [vmem:[#allocation2 + $0x18] sm:$0x3] %vm596_vm2, %v2208_v5  ;;  %601 = vst.msk [vmem:[#allocation2 + $0x28] sm:$0x3] %vm596_vm2, %v2208_v5  ;;  %2176 = vmatprep.subr.msk.bf16.mxu0 %vm664_vm3, %v637_v7  ;;  %v746_v9 = vsel %vm664_vm3, %v637_v7, 0  ;;  %s2551_s14 = scalar_lea.vmem %s2595_s13, %s1985_s29 }
  0x10   : > { %v2298_v1 = vld [vmem:[%s435_s15] sm:$0xff]   ;;  %v2300_v2 = vld [vmem:[%s435_s15 + $0x8] sm:$0xff]   ;;  %v2304_v3 = vld [vmem:[%s435_s15 + $0x10] sm:$0xff]   ;;  %604 = vst.msk [vmem:[#allocation2 + $0x40] sm:$0xff] %vm594_vm1, %v2208_v5 }
  0x11   : > { %2057 = vmatprep.mubr.msk.bf16.mxu0 %vm478_vm0, %v2298_v1  ;;  %v2310_v4 = vld [vmem:[%s435_s15 + $0x18] sm:$0xff]   ;;  %605 = vst.msk [vmem:[#allocation2 + $0x48] sm:$0x3] %vm596_vm2, %v2208_v5  ;;  %607 = vst.msk [vmem:[#allocation2 + $0x58] sm:$0x3] %vm596_vm2, %v2208_v5 }
  0x12   : > { %2058 = vmatmul.mubr.msk.bf16.vlgmr.msra.gmra.mxu0 %vm478_vm0, %v2300_v2  ;;  %606 = vst.msk [vmem:[#allocation2 + $0x50] sm:$0xff] %vm594_vm1, %v2208_v5  ;;  %608 = vst.msk [vmem:[#allocation2 + $0x60] sm:$0xff] %vm594_vm1, %v2208_v5  ;;  %v1925_v10 = vld [vmem:[%s2586_s4 + $0x8] sm:$0xf]  ;;  %v1930_v11 = vld [vmem:[%s2586_s4 + $0xc] sm:$0xf] }
  0x13   : > { %2061 = vmatprep.mubr.msk.bf16.mxu0 %vm478_vm0, %v2304_v3  ;;  %609 = vst.msk [vmem:[#allocation2 + $0x68] sm:$0x3] %vm596_vm2, %v2208_v5  ;;  %611 = vst.msk [vmem:[#allocation2 + $0x78] sm:$0x3] %vm596_vm2, %v2208_v5  ;;  %2076 = vmatpush3.bf16.msra.mxu0 %v746_v9  ;;  %v1914_v12 = vld [vmem:[%s2584_s2] ss:$0 sm:$0xff] }
  0x14   : > { %610 = vst.msk [vmem:[#allocation2 + $0x70] sm:$0xff] %vm594_vm1, %v2208_v5  ;;  %612 = vst.msk [vmem:[#allocation2 + $0x80] sm:$0xff] %vm594_vm1, %v2208_v5  ;;  %2177 = vmatprep.subr.msk.bf16.mxu1 %vm664_vm3, %v1925_v10  ;;  %2178 = vmatprep.subr.msk.bf16.mxu0 %vm664_vm3, %v1930_v11  ;;  %v1915_v14 = vld [vmem:[%s2585_s3] ss:$0 sm:$0xff]  ;;  %v638_v40 = vld [vmem:[#allocation2 + $0x1] sm:$0xff]  ;;  %v840_v58 = vsel %vm664_vm3, %v1925_v10, 0 }
  0x15   : > { %613 = vst.msk [vmem:[#allocation2 + $0x88] sm:$0x3] %vm596_vm2, %v2208_v5  ;;  %615 = vst.msk [vmem:[#allocation2 + $0x98] sm:$0x3] %vm596_vm2, %v2208_v5  ;;  %v625_v41 = vld [vmem:[#allocation2] sm:$0xff]  ;;  %v942_v59 = vsel %vm664_vm3, %v1930_v11, 0 }
  0x16   : > { %614 = vst.msk [vmem:[#allocation2 + $0x90] sm:$0xff] %vm594_vm1, %v2208_v5  ;;  %v1935_v60 = vld [vmem:[%s2586_s4 + $0x10] sm:$0xf]  ;;  %v1940_v61 = vld [vmem:[%s2586_s4 + $0x14] sm:$0xf]  ;;  %v813_v9 = vld [vmem:[#allocation2 + $0x2] sm:$0xff] }
  0x1a   : > { %2062 = vmatmul.mubr.msk.bf16.gmra.mxu0 %vm478_vm0, %v2310_v4 }
  0xd2   : > { %v2059_v13 = vpop.f32.mrf.mxu0 }
  0xd3   : > { %v565_v15 = vmul.f32 %v2059_v13, %v1914_v12 }
  0xd4   : > { %v525_v16 = vpop.f32.mrf.mxu0 }
  0xd5   : > { %v580_v17 = vadd.f32 %v1915_v14, %v565_v15  ;;  %v563_v18 = vmul.f32 %v1914_v12, %v525_v16 }
  0xd6   : > { %v2060_v19 = vpop.f32.mrf.mxu0 }
  0xd7   : > { %v588_v20 = vmax.f32 %v580_v17, 0.0  ;;  %v578_v21 = vadd.f32 %v1915_v14, %v563_v18  ;;  %v566_v22 = vmul.f32 %v2060_v19, %v1914_v12 }
  0xd8   : > { %v528_v23 = vpop.f32.mrf.mxu0 }
  0xd9   : > { %619 = vst.msk [vmem:[#allocation2 + $0x31] sm:$0xff] %vm594_vm1, %v588_v20  ;;  %v586_v24 = vmax.f32 %v578_v21, 0.0  ;;  %v581_v25 = vadd.f32 %v1915_v14, %v566_v22  ;;  %v564_v26 = vmul.f32 %v1914_v12, %v528_v23  ;;  %v1044_v23 = vsel %vm664_vm3, %v1935_v60, 0 }
  0xda   : > { %v2063_v27 = vpop.f32.mrf.mxu0 }
  0xdb   : > { %617 = vst.msk [vmem:[#allocation2 + $0x11] sm:$0xff] %vm594_vm1, %v586_v24  ;;  %v589_v28 = vmax.f32 %v581_v25, 0.0  ;;  %v579_v29 = vadd.f32 %v1915_v14, %v564_v26  ;;  %v569_v30 = vmul.f32 %v2063_v27, %v1914_v12  ;;  %v1146_v26 = vsel %vm664_vm3, %v1940_v61, 0 }
  0xdc   : > { %v541_v31 = vpop.f32.mrf.mxu0 }
  0xdd   : > { %620 = vst.msk [vmem:[#allocation2 + $0x41] sm:$0xff] %vm594_vm1, %v589_v28  ;;  %v587_v32 = vmax.f32 %v579_v29, 0.0  ;;  %v584_v33 = vadd.f32 %v1915_v14, %v569_v30  ;;  %v567_v34 = vmul.f32 %v1914_v12, %v541_v31  ;;  %v1945_v28 = vld [vmem:[%s2586_s4 + $0x18] sm:$0xf]  ;;  %v1950_v29 = vld [vmem:[%s2586_s4 + $0x1c] sm:$0xf] }
  0xde   : > { %v2064_v35 = vpop.f32.mrf.mxu0 }
  0xdf   : > { %618 = vst.msk [vmem:[#allocation2 + $0x21] sm:$0xff] %vm594_vm1, %v587_v32  ;;  %v592_v36 = vmax.f32 %v584_v33, 0.0  ;;  %v582_v37 = vadd.f32 %v1915_v14, %v567_v34  ;;  %v570_v38 = vmul.f32 %v2064_v35, %v1914_v12 }
  0xe0   : > { %v544_v39 = vpop.f32.mrf.mxu0  ;;  %v2370_v52 = vld [vmem:[#allocation2 + $0x31] sm:$0xff] }
  0xe1   : > { %623 = vst.msk [vmem:[#allocation2 + $0x71] sm:$0xff] %vm594_vm1, %v592_v36  ;;  %v590_v42 = vmax.f32 %v582_v37, 0.0  ;;  %v585_v43 = vadd.f32 %v1915_v14, %v570_v38  ;;  %v568_v44 = vmul.f32 %v1914_v12, %v544_v39  ;;  %v628_v55 = vld [vmem:[#allocation2 + $0x30] sm:$0xff]  ;;  %v1249_v39 = vsel %vm664_vm3, %v1945_v28, 0 }
  0xe2   : > { %v2363_v45 = vld [vmem:[#allocation2 + $0x11] sm:$0xff] }
  0xe3   : > { %v626_v46 = vld [vmem:[#allocation2 + $0x10] sm:$0xff]  ;;  %621 = vst.msk [vmem:[#allocation2 + $0x51] sm:$0xff] %vm594_vm1, %v590_v42  ;;  %v593_v47 = vmax.f32 %v585_v43, 0.0  ;;  %v583_v48 = vadd.f32 %v1915_v14, %v568_v44  ;;  %v646_v49 = vpack.c.bf16 %v2363_v45, %v638_v40  ;;  %v1955_v43 = vld [vmem:[%s2586_s4 + $0x20] sm:$0xf] }
  0xe4   : > { %v633_v50 = vpack.c.bf16 %v626_v46, %v625_v41  ;;  %v2393_v62 = vld [vmem:[#allocation2 + $0x41] sm:$0xff]  ;;  %v814_v10 = vld [vmem:[#allocation2 + $0x12] sm:$0xff]  ;;  %v1351_v41 = vsel %vm664_vm3, %v1950_v29, 0 }
  0xe5   : > { %624 = vst.msk [vmem:[#allocation2 + $0x81] sm:$0xff] %vm594_vm1, %v593_v47  ;;  %v591_v51 = vmax.f32 %v583_v48, 0.0  ;;  %2067 = vmatprep.mubr.msk.bf16.mxu1 %vm594_vm1, %v646_v49  ;;  %v629_v0 = vld [vmem:[#allocation2 + $0x40] sm:$0xff]  ;;  %v821_v16 = vpack.c.bf16 %v814_v10, %v813_v9  ;;  %v816_v20 = vld [vmem:[#allocation2 + $0x32] sm:$0xff]  ;;  %v1026_v37 = vpack.c.bf16 %v2393_v62, %v2370_v52  ;;  %v1453_v48 = vsel %vm664_vm3, %v1955_v43, 0 }
  0xe6   : > { %2077 = vmatprep.mubr.msk.bf16.mxu0 %vm594_vm1, %v633_v50  ;;  %v2372_v53 = vld [vmem:[#allocation2 + $0x21] sm:$0xff]  ;;  %v924_v22 = vpack.c.bf16 %v629_v0, %v628_v55  ;;  %v1229_v49 = vld [vmem:[#allocation2 + $0x90] sm:$0xff] }
  0xe7   : > { %v627_v54 = vld [vmem:[#allocation2 + $0x20] sm:$0xff]  ;;  %622 = vst.msk [vmem:[#allocation2 + $0x61] sm:$0xff] %vm594_vm1, %v591_v51  ;;  %v2377_v56 = vpack.c.bf16 %v2370_v52, %v2372_v53  ;;  %v1025_v35 = vpack.c.bf16 %v2372_v53, %v2363_v45  ;;  %v1331_v50 = vld [vmem:[#allocation2 + $0x91] sm:$0xff] }
  0xe8   : > { %v2379_v57 = vpack.c.bf16 %v628_v55, %v627_v54  ;;  %v2409_v8 = vld [vmem:[#allocation2 + $0x71] sm:$0xff]  ;;  %v923_v17 = vpack.c.bf16 %v627_v54, %v626_v46  ;;  %v815_v18 = vld [vmem:[#allocation2 + $0x22] sm:$0xff] }
  0xe9   : > { %2068 = vmatmul.mubr.msk.bf16.vlgmr.msra.gmra.mxu1 %vm594_vm1, %v2377_v56  ;;  %v632_v13 = vld [vmem:[#allocation2 + $0x70] sm:$0xff]  ;;  %v822_v21 = vpack.c.bf16 %v816_v20, %v815_v18  ;;  %v817_v24 = vld [vmem:[#allocation2 + $0x42] sm:$0xff]  ;;  %v1127_v36 = vpack.c.bf16 %v815_v18, %v814_v10 }
  0xea   : > { %2078 = vmatmul.mubr.msk.bf16.vlgmr.msra.gmra.mxu0 %vm594_vm1, %v2379_v57  ;;  %2086 = vmatpush3.bf16.msra.mxu1 %v840_v58  ;;  %v2395_v63 = vld [vmem:[#allocation2 + $0x51] sm:$0xff]  ;;  %v1128_v38 = vpack.c.bf16 %v817_v24, %v816_v20  ;;  %v1570_v55 = vld [vmem:[%s2589_s7] sm:$0xf] }
  0xeb   : > { %v630_v5 = vld [vmem:[#allocation2 + $0x50] sm:$0xff]  ;;  %2096 = vmatpush3.bf16.msra.mxu0 %v942_v59  ;;  %v2399_v6 = vpack.c.bf16 %v2395_v63, %v2393_v62  ;;  %2179 = vmatprep.subr.msk.bf16.mxu1 %vm664_vm3, %v1935_v60 }
  0xec   : > { %v2401_v7 = vpack.c.bf16 %v630_v5, %v629_v0  ;;  %2180 = vmatprep.subr.msk.bf16.mxu0 %vm664_vm3, %v1940_v61  ;;  %v818_v19 = vld [vmem:[#allocation2 + $0x52] sm:$0xff]  ;;  %v922_v31 = vld [vmem:[#allocation2 + $0x80] sm:$0xff] }
  0xed   : > { %2071 = vmatprep.mubr.msk.bf16.mxu1 %vm594_vm1, %v2399_v6  ;;  %v823_v25 = vpack.c.bf16 %v818_v19, %v817_v24  ;;  %v820_v32 = vld [vmem:[#allocation2 + $0x72] sm:$0xff]  ;;  %v926_v34 = vpack.c.bf16 %v922_v31, %v632_v13  ;;  %v1024_v44 = vld [vmem:[#allocation2 + $0x81] sm:$0xff]  ;;  %v1233_v51 = vpack.c.bf16 %v1229_v49, %v922_v31 }
  0xee   : > { %2081 = vmatprep.mubr.msk.bf16.mxu0 %vm594_vm1, %v2401_v7  ;;  %v644_v11 = vld [vmem:[#allocation2 + $0x61] sm:$0xff]  ;;  %v1028_v46 = vpack.c.bf16 %v1024_v44, %v2409_v8  ;;  %v1335_v52 = vpack.c.bf16 %v1331_v50, %v1024_v44  ;;  %v1433_v53 = vld [vmem:[#allocation2 + $0x92] sm:$0xff] }
  0xef   : > { %v631_v12 = vld [vmem:[#allocation2 + $0x60] sm:$0xff]  ;;  %v2412_v14 = vpack.c.bf16 %v2409_v8, %v644_v11  ;;  %v1027_v40 = vpack.c.bf16 %v644_v11, %v2395_v63 }
  0xf0   : > { %v2414_v15 = vpack.c.bf16 %v632_v13, %v631_v12  ;;  %v925_v27 = vpack.c.bf16 %v631_v12, %v630_v5  ;;  %v819_v30 = vld [vmem:[#allocation2 + $0x62] sm:$0xff] }
  0xf1   : > { %2072 = vmatmul.mubr.msk.bf16.gmra.mxu1 %vm594_vm1, %v2412_v14  ;;  %v824_v33 = vpack.c.bf16 %v820_v32, %v819_v30  ;;  %v1129_v42 = vpack.c.bf16 %v819_v30, %v818_v19  ;;  %v1126_v45 = vld [vmem:[#allocation2 + $0x82] sm:$0xff] }
  0xf2   : > { %2082 = vmatmul.mubr.msk.bf16.gmra.mxu0 %vm594_vm1, %v2414_v15  ;;  %2087 = vmatprep.mubr.msk.bf16.mxu1 %vm594_vm1, %v821_v16  ;;  %v1130_v47 = vpack.c.bf16 %v1126_v45, %v820_v32  ;;  %v1437_v54 = vpack.c.bf16 %v1433_v53, %v1126_v45 }
  0xf3   : > { %2097 = vmatprep.mubr.msk.bf16.mxu0 %vm594_vm1, %v923_v17 }
  0xf9   : > { %2088 = vmatmul.mubr.msk.bf16.vlgmr.msra.gmra.mxu1 %vm594_vm1, %v822_v21 }
  0xfa   : > { %2098 = vmatmul.mubr.msk.bf16.vlgmr.msra.gmra.mxu0 %vm594_vm1, %v924_v22  ;;  %2106 = vmatpush3.bf16.msra.mxu1 %v1044_v23 }
  0xfb   : > { %2091 = vmatprep.mubr.msk.bf16.mxu1 %vm594_vm1, %v823_v25  ;;  %2101 = vmatprep.mubr.msk.bf16.mxu0 %vm594_vm1, %v925_v27 }
  0xfc   : > { %2116 = vmatpush3.bf16.msra.mxu0 %v1146_v26  ;;  %2181 = vmatprep.subr.msk.bf16.mxu1 %vm664_vm3, %v1945_v28 }
  0xfd   : > { %2182 = vmatprep.subr.msk.bf16.mxu0 %vm664_vm3, %v1950_v29 }
 0x101   : > { %2092 = vmatmul.mubr.msk.bf16.gmra.mxu1 %vm594_vm1, %v824_v33 }
 0x102   : > { %2102 = vmatmul.mubr.msk.bf16.gmra.mxu0 %vm594_vm1, %v926_v34  ;;  %2107 = vmatprep.mubr.msk.bf16.mxu1 %vm594_vm1, %v1025_v35 }
 0x103   : > { %2117 = vmatprep.mubr.msk.bf16.mxu0 %vm594_vm1, %v1127_v36 }
 0x109   : > { %2108 = vmatmul.mubr.msk.bf16.vlgmr.msra.gmra.mxu1 %vm594_vm1, %v1026_v37 }
 0x10a   : > { %2118 = vmatmul.mubr.msk.bf16.vlgmr.msra.gmra.mxu0 %vm594_vm1, %v1128_v38  ;;  %2126 = vmatpush3.bf16.msra.mxu1 %v1249_v39 }
 0x10b   : > { %2111 = vmatprep.mubr.msk.bf16.mxu1 %vm594_vm1, %v1027_v40  ;;  %2121 = vmatprep.mubr.msk.bf16.mxu0 %vm594_vm1, %v1129_v42 }
 0x10c   : > { %2136 = vmatpush3.bf16.msra.mxu0 %v1351_v41  ;;  %2183 = vmatprep.subr.msk.bf16.mxu1 %vm664_vm3, %v1955_v43 }
 0x10d   : > { %2184 = vmatprep.subr.msk.bf16.mxu0 %vm664_vm3, %v1570_v55 }
 0x111   : > { %2112 = vmatmul.mubr.msk.bf16.gmra.mxu1 %vm594_vm1, %v1028_v46 }
 0x112   : > { %2122 = vmatmul.mubr.msk.bf16.gmra.mxu0 %vm594_vm1, %v1130_v47  ;;  %2127 = vmatprep.mubr.msk.bf16.mxu1 %vm594_vm1, %v2379_v57  ;;  %v1584_v57 = vsel %vm664_vm3, %v1570_v55, 0 }
 0x113   : > { %2137 = vmatprep.mubr.msk.bf16.mxu0 %vm594_vm1, %v2377_v56  ;;  %v2199_v56 = vld [vmem:[%s2592_s10] sm:$0xff]  }
 0x119   : > { %2128 = vmatmul.mubr.msk.bf16.vlgmr.msra.gmra.mxu1 %vm594_vm1, %v2401_v7 }
 0x11a   : > { %2138 = vmatmul.mubr.msk.bf16.vlgmr.msra.gmra.mxu0 %vm594_vm1, %v2399_v6  ;;  %2146 = vmatpush3.bf16.msra.mxu1 %v1453_v48 }
 0x11b   : > { %2131 = vmatprep.mubr.msk.bf16.mxu1 %vm594_vm1, %v2414_v15  ;;  %2141 = vmatprep.mubr.msk.bf16.mxu0 %vm594_vm1, %v2412_v14 }
 0x11c   : > { %2165 = vmatprep.subr.bf16.mxu1 %v2199_v56  ;;  %2156 = vmatpush3.bf16.msra.mxu0 %v1584_v57 }
 0x121   : > { %2132 = vmatmul.mubr.msk.bf16.gmra.mxu1 %vm594_vm1, %v1233_v51 }
 0x122   : > { %2142 = vmatmul.mubr.msk.bf16.gmra.mxu0 %vm594_vm1, %v1335_v52  ;;  %2147 = vmatprep.mubr.msk.bf16.mxu1 %vm594_vm1, %v822_v21 }
 0x129   : > { %2148 = vmatmul.mubr.msk.bf16.vlgmr.msra.gmra.mxu1 %vm594_vm1, %v823_v25 }
 0x12a   : > { %2151 = vmatprep.mubr.msk.bf16.mxu1 %vm594_vm1, %v824_v33  ;;  %2166 = vmatpush3.bf16.msra.mxu1 %v2199_v56 }
 0x131   : > { %2152 = vmatmul.mubr.msk.bf16.gmra.mxu1 %vm594_vm1, %v1437_v54 }
 0x132   : > { %2167 = vmatprep.mubr.msk.bf16.mxu1 %vm478_vm0, %v2298_v1 }
 0x139   : > { %2168 = vmatmul.mubr.msk.bf16.vlgmr.msra.gmra.mxu1 %vm478_vm0, %v2300_v2 }
 0x13a   : > { %2171 = vmatprep.mubr.msk.bf16.mxu1 %vm478_vm0, %v2304_v3 }
 0x141   : > { %2172 = vmatmul.mubr.msk.bf16.gmra.mxu1 %vm478_vm0, %v2310_v4 }
 0x1a9   : > { %v2069_v1 = vpop.f32.mrf.mxu1 }
 0x1aa   : > { %v2079_v58 = vpop.f32.mrf.mxu0 }
 0x1ab   : > { %v702_v59 = vpop.f32.mrf.mxu1  ;;  %v791_v40 = vadd.f32 %v2079_v58, %v2069_v1 }
 0x1ac   : > { %v782_v60 = vpop.f32.mrf.mxu0 }
 0x1ad   : > { %v2070_v61 = vpop.f32.mrf.mxu1  ;;  %v783_v43 = vadd.f32 %v782_v60, %v702_v59 }
 0x1ae   : > { %v2080_v62 = vpop.f32.mrf.mxu0 }
 0x1af   : > { %v705_v63 = vpop.f32.mrf.mxu1  ;;  %v794_v47 = vadd.f32 %v2080_v62, %v2070_v61 }
 0x1b0   : > { %v785_v0 = vpop.f32.mrf.mxu0 }
 0x1b1   : > { %v2073_v5 = vpop.f32.mrf.mxu1  ;;  %v786_v50 = vadd.f32 %v785_v0, %v705_v63 }
 0x1b2   : > { %v2083_v6 = vpop.f32.mrf.mxu0 }
 0x1b3   : > { %v718_v7 = vpop.f32.mrf.mxu1  ;;  %v807_v57 = vadd.f32 %v2083_v6, %v2073_v5 }
 0x1b4   : > { %v798_v8 = vpop.f32.mrf.mxu0 }
 0x1b5   : > { %v2493_v9 = vpop.f32.mrf.mxu1 }
 0x1b6   : > { %v2084_v2 = vpop.f32.mrf.mxu0 }
 0x1b7   : > { %v2495_v10 = vpop.f32.mrf.mxu1  ;;  %v810_v63 = vadd.f32 %v2084_v2, %v2493_v9 }
 0x1b8   : > { %v2497_v3 = vpop.f32.mrf.mxu0 }
 0x1b9   : > { %v2089_v4 = vpop.f32.mrf.mxu1 }
 0x1ba   : > { %v2099_v11 = vpop.f32.mrf.mxu0  ;;  %v909_v44 = vadd.f32 %v2089_v4, %v791_v40 }
 0x1bb   : > { %v876_v12 = vpop.f32.mrf.mxu1 }
 0x1bc   : > { %v978_v13 = vpop.f32.mrf.mxu0  ;;  %v907_v48 = vadd.f32 %v876_v12, %v783_v43  ;;  %v1011_v52 = vadd.f32 %v2099_v11, %v909_v44  ;;  %v802_v12 = vadd.f32 %v2497_v3, %v2495_v10 }
 0x1bd   : > { %v2090_v14 = vpop.f32.mrf.mxu1 }
 0x1be   : > { %v2100_v15 = vpop.f32.mrf.mxu0  ;;  %v910_v51 = vadd.f32 %v2090_v14, %v794_v47  ;;  %v1009_v55 = vadd.f32 %v978_v13, %v907_v48 }
 0x1bf   : > { %v879_v16 = vpop.f32.mrf.mxu1 }
 0x1c0   : > { %v981_v17 = vpop.f32.mrf.mxu0  ;;  %v908_v56 = vadd.f32 %v879_v16, %v786_v50 }
 0x1c1   : > { %v2093_v18 = vpop.f32.mrf.mxu1 }
 0x1c2   : > { %v2103_v19 = vpop.f32.mrf.mxu0  ;;  %v913_v59 = vadd.f32 %v2093_v18, %v807_v57  ;;  %v1010_v61 = vadd.f32 %v981_v17, %v908_v56 }
 0x1c3   : > { %v892_v20 = vpop.f32.mrf.mxu1 }
 0x1c4   : > { %v994_v21 = vpop.f32.mrf.mxu0  ;;  %v1015_v6 = vadd.f32 %v2103_v19, %v913_v59 }
 0x1c5   : > { %v2094_v22 = vpop.f32.mrf.mxu1 }
 0x1c6   : > { %v2499_v23 = vpop.f32.mrf.mxu0 }
 0x1c7   : > { %v895_v24 = vpop.f32.mrf.mxu1 }
 0x1c8   : > { %v2501_v25 = vpop.f32.mrf.mxu0  ;;  %v912_v18 = vadd.f32 %v895_v24, %v802_v12 }
 0x1c9   : > { %2596 = vst [vmem:[#allocation3_spill] sm:$0xff] %v2501_v25  ;;  %v2109_v26 = vpop.f32.mrf.mxu1  ;;  %v1012_v25 = vadd.f32 %v2100_v15, %v910_v51 }
 0x1ca   : > { %v2119_v27 = vpop.f32.mrf.mxu0  ;;  %v1113_v1 = vadd.f32 %v2109_v26, %v1011_v52 }
 0x1cb   : > { %v1080_v28 = vpop.f32.mrf.mxu1 }
 0x1cc   : > { %v1182_v29 = vpop.f32.mrf.mxu0  ;;  %v1215_v0 = vadd.f32 %v2119_v27, %v1113_v1 }
 0x1cd   : > { %v2110_v30 = vpop.f32.mrf.mxu1 }
 0x1ce   : > { %v2120_v31 = vpop.f32.mrf.mxu0  ;;  %v1114_v62 = vadd.f32 %v2110_v30, %v1012_v25 }
 0x1cf   : > { %v1083_v32 = vpop.f32.mrf.mxu1 }
 0x1d0   : > { %v1185_v33 = vpop.f32.mrf.mxu0  ;;  %v1112_v5 = vadd.f32 %v1083_v32, %v1010_v61 }
 0x1d1   : > { %v2113_v34 = vpop.f32.mrf.mxu1 }
 0x1d2   : > { %v2123_v35 = vpop.f32.mrf.mxu0  ;;  %v1117_v17 = vadd.f32 %v2113_v34, %v1015_v6  ;;  %v1214_v9 = vadd.f32 %v1185_v33, %v1112_v5  ;;  %v1960_v33 = vld [vmem:[%s2587_s5] ss:$0 sm:$0xff] }
 0x1d3   : > { %v1096_v36 = vpop.f32.mrf.mxu1 }
 0x1d4   : > { %v1198_v37 = vpop.f32.mrf.mxu0  ;;  %v1219_v32 = vadd.f32 %v2123_v35, %v1117_v17 }
 0x1d5   : > { %v2114_v38 = vpop.f32.mrf.mxu1 }
 0x1d6   : > { %v2503_v39 = vpop.f32.mrf.mxu0 }
 0x1d7   : > { %2597 = vst [vmem:[#allocation4_spill] sm:$0xff] %v2503_v39  ;;  %v1099_v41 = vpop.f32.mrf.mxu1  ;;  %v799_v39 = vadd.f32 %v798_v8, %v718_v7  ;;  %v914_v8 = vadd.f32 %v2094_v22, %v810_v63 }
 0x1d8   : > { %v2505_v42 = vpop.f32.mrf.mxu0 }
 0x1d9   : > { %2598 = vst [vmem:[#allocation5_spill] sm:$0xff] %v2505_v42  ;;  %v2129_v45 = vpop.f32.mrf.mxu1  ;;  %v1111_v42 = vadd.f32 %v1080_v28, %v1009_v55  ;;  %v911_v60 = vadd.f32 %v892_v20, %v799_v39  ;;  %v1216_v20 = vadd.f32 %v2120_v31, %v1114_v62  ;;  %v1016_v27 = vadd.f32 %v2499_v23, %v914_v8 }
 0x1da   : > { %v2139_v46 = vpop.f32.mrf.mxu0  ;;  %v1318_v14 = vadd.f32 %v2129_v45, %v1215_v0 }
 0x1db   : > { %v1285_v49 = vpop.f32.mrf.mxu1  ;;  %v1213_v13 = vadd.f32 %v1182_v29, %v1111_v42  ;;  %v1013_v7 = vadd.f32 %v994_v21, %v911_v60  ;;  %v2599_v29 = vld [vmem:[#allocation3_spill] sm:$0xff]  ;;  %v1118_v42 = vadd.f32 %v2114_v38, %v1016_v27 }
 0x1dc   : > { %v1387_v53 = vpop.f32.mrf.mxu0  ;;  %v1420_v30 = vadd.f32 %v2139_v46, %v1318_v14  ;;  %v1014_v19 = vadd.f32 %v2599_v29, %v912_v18 }
 0x1dd   : > { %v2130_v54 = vpop.f32.mrf.mxu1  ;;  %v1316_v26 = vadd.f32 %v1285_v49, %v1213_v13  ;;  %v1115_v25 = vadd.f32 %v1096_v36, %v1013_v7 }
 0x1de   : > { %v2140_v4 = vpop.f32.mrf.mxu0  ;;  %v1319_v2 = vadd.f32 %v2130_v54, %v1216_v20  ;;  %v1116_v43 = vadd.f32 %v1099_v41, %v1014_v19  ;;  %v2600_v50 = vld [vmem:[#allocation4_spill] sm:$0xff]  ;;  %v1961_v41 = vld [vmem:[%s2588_s6] ss:$0 sm:$0xff] }
 0x1df   : > { %v1288_v58 = vpop.f32.mrf.mxu1  ;;  %v1418_v21 = vadd.f32 %v1387_v53, %v1316_v26  ;;  %v1217_v39 = vadd.f32 %v1198_v37, %v1115_v25  ;;  %v1220_v35 = vadd.f32 %v2600_v50, %v1118_v42 }
 0x1e0   : > { %v1390_v15 = vpop.f32.mrf.mxu0  ;;  %v1317_v22 = vadd.f32 %v1288_v58, %v1214_v9  ;;  %v1421_v34 = vadd.f32 %v2140_v4, %v1319_v2  ;;  %v2601_v51 = vld [vmem:[#allocation5_spill] sm:$0xff] }
 0x1e1   : > { %v2133_v40 = vpop.f32.mrf.mxu1  ;;  %v1218_v52 = vadd.f32 %v2601_v51, %v1116_v43 }
 0x1e2   : > { %v2143_v10 = vpop.f32.mrf.mxu0  ;;  %v1322_v23 = vadd.f32 %v2133_v40, %v1219_v32  ;;  %v1419_v47 = vadd.f32 %v1390_v15, %v1317_v22 }
 0x1e3   : > { %v1301_v11 = vpop.f32.mrf.mxu1 }
 0x1e4   : > { %v1320_v44 = vadd.f32 %v1301_v11, %v1217_v39  ;;  %v1403_v45 = vpop.f32.mrf.mxu0  ;;  %v1424_v55 = vadd.f32 %v2143_v10, %v1322_v23  ;;  %v2530_v23 = vld [vmem:[%s2594_s12] ss:$0 sm:$0xff] }
 0x1e5   : > { %v2134_v16 = vpop.f32.mrf.mxu1 }
 0x1e6   : > { %v1422_v56 = vadd.f32 %v1403_v45, %v1320_v44  ;;  %v1323_v57 = vadd.f32 %v2134_v16, %v1220_v35  ;;  %v2144_v1 = vpop.f32.mrf.mxu0  ;;  %v1966_v44 = vld [vmem:[%s2590_s8] ss:$0 sm:$0xff] }
 0x1e7   : > { %v1304_v28 = vpop.f32.mrf.mxu1 }
 0x1e8   : > { %v1321_v59 = vadd.f32 %v1304_v28, %v1218_v52  ;;  %v1425_v12 = vadd.f32 %v2144_v1, %v1323_v57  ;;  %v1406_v13 = vpop.f32.mrf.mxu0 }
 0x1e9   : > { %v2149_v3 = vpop.f32.mrf.mxu1 }
 0x1ea   : > { %v1522_v24 = vadd.f32 %v2149_v3, %v1420_v30  ;;  %v1423_v7 = vadd.f32 %v1406_v13, %v1321_v59 }
 0x1eb   : > { %v1489_v31 = vpop.f32.mrf.mxu1 }
 0x1ec   : > { %v1520_v36 = vadd.f32 %v1489_v31, %v1418_v21  ;;  %v1537_v37 = vmul.f32 %v1960_v33, %v1522_v24 }
 0x1ed   : > { %v2150_v46 = vpop.f32.mrf.mxu1 }
 0x1ee   : > { %v1535_v48 = vmul.f32 %v1960_v33, %v1520_v36  ;;  %v1523_v49 = vadd.f32 %v2150_v46, %v1421_v34  ;;  %v1552_v61 = vadd.f32 %v1961_v41, %v1537_v37  ;;  %v1973_v34 = vld [vmem:[%s2593_s11] ss:$0 sm:$0xff] }
 0x1ef   : > { %v1492_v38 = vpop.f32.mrf.mxu1  ;;  %v2538_v46 = vld [vmem:[%s2591_s9] ss:$0 sm:$0xff] }
 0x1f0   : > { %v1538_v53 = vmul.f32 %v1960_v33, %v1523_v49  ;;  %v1521_v54 = vadd.f32 %v1492_v38, %v1419_v47  ;;  %v1550_v60 = vadd.f32 %v1961_v41, %v1535_v48  ;;  %v1560_v16 = vmax.f32 %v1552_v61, 0.0 }
 0x1f1   : > { %v2153_v58 = vpop.f32.mrf.mxu1 }
 0x1f2   : > { %v1553_v4 = vadd.f32 %v1961_v41, %v1538_v53  ;;  %v1536_v40 = vmul.f32 %v1960_v33, %v1521_v54  ;;  %v1526_v62 = vadd.f32 %v2153_v58, %v1424_v55  ;;  %v1558_v8 = vmax.f32 %v1550_v60, 0.0 }
 0x1f3   : > { %v1505_v63 = vpop.f32.mrf.mxu1 }
 0x1f4   : > { %v1551_v0 = vadd.f32 %v1961_v41, %v1536_v40  ;;  %v1524_v11 = vadd.f32 %v1505_v63, %v1422_v56  ;;  %v1561_v5 = vmax.f32 %v1553_v4, 0.0  ;;  %v1541_v18 = vmul.f32 %v1960_v33, %v1526_v62 }
 0x1f5   : > { %v2154_v6 = vpop.f32.mrf.mxu1 }
 0x1f6   : > { %v1559_v14 = vmax.f32 %v1551_v0, 0.0  ;;  %v1539_v15 = vmul.f32 %v1960_v33, %v1524_v11  ;;  %v1527_v20 = vadd.f32 %v2154_v6, %v1425_v12  ;;  %v1567_v28 = vpack.c.bf16 %v1561_v5, %v1560_v16 }
 0x1f7   : > { %v1508_v26 = vpop.f32.mrf.mxu1  ;;  %v1556_v30 = vadd.f32 %v1961_v41, %v1541_v18 }
 0x1f8   : > { %v1566_v17 = vpack.c.bf16 %v1559_v14, %v1558_v8  ;;  %v1525_v25 = vadd.f32 %v1508_v26, %v1423_v7  ;;  %v1542_v9 = vmul.f32 %v1960_v33, %v1527_v20  ;;  %v1554_v2 = vadd.f32 %v1961_v41, %v1539_v15 }
 0x1f9   : > { %v1564_v22 = vmax.f32 %v1556_v30, 0.0  ;;  %v2169_v42 = vpop.f32.mrf.mxu1 }
 0x1fa   : > { %v1540_v27 = vmul.f32 %v1960_v33, %v1525_v25  ;;  %2157 = vmatprep.mubr.msk.bf16.mxu0 %vm594_vm1, %v1566_v17  ;;  %v1557_v10 = vadd.f32 %v1961_v41, %v1542_v9  ;;  %v1562_v19 = vmax.f32 %v1554_v2, 0.0  ;;  %v1763_v33 = vmul.f32 %v2169_v42, %v1973_v34 }
 0x1fb   : > { %2158 = vmatmul.mubr.msk.bf16.vlgmr.msra.gmra.mxu0 %vm594_vm1, %v1567_v28  ;;  %v1723_v24 = vpop.f32.mrf.mxu1 }
 0x1fc   : > { %v1555_v3 = vadd.f32 %v1961_v41, %v1540_v27  ;;  %v1565_v29 = vmax.f32 %v1557_v10, 0.0  ;;  %v1778_v47 = vadd.f32 %v2530_v23, %v1763_v33  ;;  %v1761_v48 = vmul.f32 %v1973_v34, %v1723_v24 }
 0x1fd   : > { %v2170_v31 = vpop.f32.mrf.mxu1 }
 0x1fe   : > { %v1563_v21 = vmax.f32 %v1555_v3, 0.0  ;;  %v1569_v39 = vpack.c.bf16 %v1565_v29, %v1564_v22  ;;  %v1764_v35 = vmul.f32 %v2170_v31, %v1973_v34  ;;  %v1776_v53 = vadd.f32 %v2530_v23, %v1761_v48 }
 0x1ff   : > { %v1726_v43 = vpop.f32.mrf.mxu1 }
 0x200   : > { %v1568_v32 = vpack.c.bf16 %v1563_v21, %v1562_v19  ;;  %v1762_v52 = vmul.f32 %v1973_v34, %v1726_v43  ;;  %v1779_v1 = vadd.f32 %v2530_v23, %v1764_v35 }
 0x201   : > { %v2173_v36 = vpop.f32.mrf.mxu1 }
 0x202   : > { %2161 = vmatprep.mubr.msk.bf16.mxu0 %vm594_vm1, %v1568_v32  ;;  %v1767_v58 = vmul.f32 %v2173_v36, %v1973_v34  ;;  %v1777_v62 = vadd.f32 %v2530_v23, %v1762_v52 }
 0x203   : > { %2162 = vmatmul.mubr.msk.bf16.gmra.mxu0 %vm594_vm1, %v1569_v39  ;;  %v1739_v50 = vpop.f32.mrf.mxu1 }
 0x204   : > { %v1765_v63 = vmul.f32 %v1973_v34, %v1739_v50  ;;  %v1782_v7 = vadd.f32 %v2530_v23, %v1767_v58 }
 0x205   : > { %v2174_v57 = vpop.f32.mrf.mxu1 }
 0x206   : > { %v1768_v8 = vmul.f32 %v2174_v57, %v1973_v34  ;;  %v1780_v17 = vadd.f32 %v2530_v23, %v1765_v63 }
 0x207   : > { %v1742_v6 = vpop.f32.mrf.mxu1 }
 0x208   : > { %v1766_v28 = vmul.f32 %v1973_v34, %v1742_v6  ;;  %v1783_v3 = vadd.f32 %v2530_v23, %v1768_v8 }
 0x20a   : > { %v1781_v24 = vadd.f32 %v2530_v23, %v1766_v28 }
 0x2bb   : > { %v2159_v45 = vpop.f32.mrf.mxu0 }
 0x2bc   : > { %v1660_v49 = vmul.f32 %v2159_v45, %v1966_v44 }
 0x2bd   : > { %v1620_v37 = vpop.f32.mrf.mxu0 }
 0x2be   : > { %v1675_v38 = vadd.f32 %v2538_v46, %v1660_v49  ;;  %v1658_v51 = vmul.f32 %v1966_v44, %v1620_v37 }
 0x2bf   : > { %v2160_v41 = vpop.f32.mrf.mxu0 }
 0x2c0   : > { %v1786_v54 = vadd.f32 %v1778_v47, %v1675_v38  ;;  %v1673_v55 = vadd.f32 %v2538_v46, %v1658_v51  ;;  %v1661_v56 = vmul.f32 %v2160_v41, %v1966_v44 }
 0x2c1   : > { %v1623_v59 = vpop.f32.mrf.mxu0 }
 0x2c2   : > { %v1794_v60 = vmax.f32 %v1786_v54, 0.0  ;;  %v1784_v4 = vadd.f32 %v1776_v53, %v1673_v55  ;;  %v1676_v40 = vadd.f32 %v2538_v46, %v1661_v56  ;;  %v1659_v61 = vmul.f32 %v1966_v44, %v1623_v59 }
 0x2c3   : > { %v2163_v0 = vpop.f32.mrf.mxu0 }
 0x2c4   : > { %v1989_v11 = vpack.c.bf16 %v1794_v60, %v1794_v60  ;;  %v1792_v12 = vmax.f32 %v1784_v4, 0.0  ;;  %v1787_v13 = vadd.f32 %v1779_v1, %v1676_v40  ;;  %v1674_v5 = vadd.f32 %v2538_v46, %v1659_v61 }
 0x2c5   : > { %v1664_v14 = vmul.f32 %v2163_v0, %v1966_v44  ;;  %v1636_v15 = vpop.f32.mrf.mxu0 }
 0x2c6   : > { %1835 = vst.msk [vmem:[%s2551_s14 + $0x8] sm:$0xf] %vm1832_vm4, %v1989_v11  ;;  %v1987_v16 = vpack.c.bf16 %v1792_v12, %v1792_v12  ;;  %v1795_v18 = vmax.f32 %v1787_v13, 0.0  ;;  %v1785_v20 = vadd.f32 %v1777_v62, %v1674_v5  ;;  %v1662_v26 = vmul.f32 %v1966_v44, %v1636_v15 }
 0x2c7   : > { %v1679_v25 = vadd.f32 %v2538_v46, %v1664_v14  ;;  %v2164_v9 = vpop.f32.mrf.mxu0 }
 0x2c8   : > { %1833 = vst.msk [vmem:[%s2551_s14] sm:$0xf] %vm1832_vm4, %v1987_v16  ;;  %v1990_v2 = vpack.c.bf16 %v1795_v18, %v1795_v18  ;;  %v1793_v27 = vmax.f32 %v1785_v20, 0.0  ;;  %v1677_v30 = vadd.f32 %v2538_v46, %v1662_v26  ;;  %v1665_v10 = vmul.f32 %v2164_v9, %v1966_v44 }
 0x2c9   : > { %v1790_v29 = vadd.f32 %v1782_v7, %v1679_v25  ;;  %v1639_v19 = vpop.f32.mrf.mxu0 }
 0x2ca   : > { %1836 = vst.msk [vmem:[%s2551_s14 + $0xc] sm:$0xf] %vm1832_vm4, %v1990_v2  ;;  %v1988_v21 = vpack.c.bf16 %v1793_v27, %v1793_v27  ;;  %v1788_v22 = vadd.f32 %v1780_v17, %v1677_v30  ;;  %v1680_v32 = vadd.f32 %v2538_v46, %v1665_v10  ;;  %v1663_v39 = vmul.f32 %v1966_v44, %v1639_v19 }
 0x2cb   : > { %v1798_v42 = vmax.f32 %v1790_v29, 0.0 }
 0x2cc   : > { %1834 = vst.msk [vmem:[%s2551_s14 + $0x4] sm:$0xf] %vm1832_vm4, %v1988_v21  ;;  %v1796_v31 = vmax.f32 %v1788_v22, 0.0  ;;  %v1791_v43 = vadd.f32 %v1783_v3, %v1680_v32  ;;  %v1678_v34 = vadd.f32 %v2538_v46, %v1663_v39 }
 0x2cd   : > { %v1993_v33 = vpack.c.bf16 %v1798_v42, %v1798_v42 }
 0x2ce   : > { %v1991_v36 = vpack.c.bf16 %v1796_v31, %v1796_v31  ;;  %v1799_v45 = vmax.f32 %v1791_v43, 0.0  ;;  %v1789_v47 = vadd.f32 %v1781_v24, %v1678_v34 }
 0x2cf   : > { %1839 = vst.msk [vmem:[%s2551_s14 + $0x18] sm:$0xf] %vm1832_vm4, %v1993_v33 }
 0x2d0   : > { %1837 = vst.msk [vmem:[%s2551_s14 + $0x10] sm:$0xf] %vm1832_vm4, %v1991_v36  ;;  %v1994_v48 = vpack.c.bf16 %v1799_v45, %v1799_v45  ;;  %v1797_v44 = vmax.f32 %v1789_v47, 0.0 }
 0x2d2   : > { %1840 = vst.msk [vmem:[%s2551_s14 + $0x1c] sm:$0xf] %vm1832_vm4, %v1994_v48  ;;  %v1992_v49 = vpack.c.bf16 %v1797_v44, %v1797_v44 }
 0x2d4   : > { %1838 = vst.msk [vmem:[%s2551_s14 + $0x14] sm:$0xf] %vm1832_vm4, %v1992_v49 }
 0x2d5 PF: > { %s23_s25 = sadd.s32 1, %s2206_s25  }
 0x2d6   : > { %p20_p4 = scmp.ge.s32.totalorder %s23_s25, 4  }
 0x2d8   :  { %22 = sbr.rel (!%p20_p4) target bundleno = 1 (0x1), region = 112 }

</bundles_post_ra>
